<compile_context>
chip_gen: v7x
topology: tpu7x:2x2x1
jax: 0.10.0
libtpu: 0.0.40
codegen_flags: <defaults>
</compile_context>

<pallas_src>
from functools import partial

import jax
import jax.numpy as jnp
import numpy as np
from jax.experimental import pallas as pl
from jax.experimental.pallas import tpu as pltpu


def _round_up(x, m):
    return ((x + m - 1) // m) * m


def _choose_tm(m_rows, block_rows):
    """Row-tile policy.

    - small batches: a single full-extent block (always layout-legal);
    - otherwise >=128 rows (MXU fill), prefer 256-granules, never exceed M
      (so no host-side padding is needed), keep the bf16 sublane granule of 16,
      and aim for >=2 grid steps so v7x's two TensorCores both get work.
    """
    if m_rows <= 128:
        return m_rows
    half = -(-m_rows // 2)                     # ceil(M/2): at least 2 row steps
    tm = min(block_rows, _round_up(half, 256))
    tm = max(128, min(tm, m_rows))
    return max(16, (tm // 16) * 16)            # bf16 packs 16 rows per sublane


def _l2norm_rows(emb):
    """Row-wise l2norm matching the reference: x / (sqrt(sum(x^2)) + 1e-8)."""
    ssq = jnp.sum(emb * emb, axis=-1, keepdims=True)     # XLU lane reduce
    inv = pl.reciprocal(jnp.sqrt(ssq) + 1e-8, approx=True)  # EUP slot, ~free
    return emb * inv


def _fc_norm_kernel(x_ref, w_ref, b_ref, o_ref, *, no_imgnorm):
    """Resident-weight path.  One grid step == tm rows.

    x_ref : (tm, img_dim) bf16   w_ref : (img_dim, embed) bf16 (resident)
    b_ref : (1, embed) f32       o_ref : (tm, embed)
    """
    emb = jnp.dot(x_ref[...], w_ref[...], preferred_element_type=jnp.float32)
    emb = emb + b_ref[...]
    if not no_imgnorm:
        emb = _l2norm_rows(emb)
    o_ref[...] = emb.astype(o_ref.dtype)


def _fc_norm_ktiled_kernel(x_ref, w_ref, b_ref, o_ref, acc_ref, *, no_imgnorm):
    """K-tiled path (large weights, v7x VMEM plan).  Grid = (rows, K).

    x_ref : (tm, tk) bf16   w_ref : (tk, embed) bf16   acc_ref : (tm, embed) f32
    """
    k = pl.program_id(1)

    @pl.when(k == 0)
    def _():
        acc_ref[...] = jnp.zeros_like(acc_ref)

    acc_ref[...] += jnp.dot(x_ref[...], w_ref[...],
                            preferred_element_type=jnp.float32)

    @pl.when(k == pl.num_programs(1) - 1)
    def _():
        emb = acc_ref[...] + b_ref[...]
        if not no_imgnorm:
            emb = _l2norm_rows(emb)
        o_ref[...] = emb.astype(o_ref.dtype)


def encoder_image_forward(images, weight, bias, *, no_imgnorm=False,
                          block_rows=512, compute_dtype=jnp.bfloat16,
                          out_dtype=jnp.float32, k_tile=None):
    """images: (..., img_dim); weight: (img_dim, embed) (pre-transposed, x @ W);
    bias: (embed,) or (1, embed).  Returns (..., embed) in out_dtype."""
    *lead, img_dim = images.shape
    embed = weight.shape[1]

    x = images.reshape(-1, img_dim).astype(compute_dtype)
    w = weight.astype(compute_dtype)
    b = jnp.asarray(bias, jnp.float32).reshape(1, embed)
    M = x.shape[0]

    in_bytes = jnp.dtype(compute_dtype).itemsize
    out_bytes = jnp.dtype(out_dtype).itemsize

    tm = _choose_tm(M, block_rows)
    row_steps = pl.cdiv(M, tm)

    # Resident-weight per-step VMEM: x double-buffered, W/bias single-buffered,
    # out double-buffered.
    resident_need = (2 * tm * img_dim * in_bytes
                     + img_dim * embed * in_bytes
                     + embed * 4
                     + 2 * tm * embed * out_bytes)

    # Switch to the K-tiled accumulator plan only when the resident plan would
    # crowd v7x's 64 MiB VMEM per TensorCore.
    if k_tile is None and resident_need > (40 << 20):
        for cand in (1024, 512, 256, 128):
            if img_dim % cand == 0 and img_dim // cand >= 2:
                k_tile = cand
                break

    use_ktile = k_tile is not None and k_tile < img_dim
    if use_ktile:
        if img_dim % k_tile != 0 or k_tile % 128 != 0:
            raise ValueError("k_tile must be a multiple of 128 that divides img_dim")
        k_steps = img_dim // k_tile
        need = (2 * tm * k_tile * in_bytes
                + 2 * k_tile * embed * in_bytes
                + embed * 4
                + 2 * tm * embed * out_bytes
                + tm * embed * 4)              # f32 accumulator scratch
    else:
        k_steps = 1
        need = resident_need

    vmem_limit = int(min(max(need + (2 << 20), 16 << 20), 100 << 20))

    cost = pl.CostEstimate(
        flops=2 * M * img_dim * embed,
        transcendentals=0 if no_imgnorm else M,
        bytes_accessed=int(M * img_dim * in_bytes + img_dim * embed * in_bytes
                           + embed * 4 + M * embed * out_bytes))

    def _build_and_run(single_buffer_resident):
        resident_mode = (dict(pipeline_mode=pl.Buffered(1))
                         if single_buffer_resident else {})
        if not use_ktile:
            grid = (row_steps,)
            in_specs = [
                pl.BlockSpec((tm, img_dim), lambda i: (i, 0)),           # rows
                pl.BlockSpec((img_dim, embed), lambda i: (0, 0),         # W resident
                             **resident_mode),
                pl.BlockSpec((1, embed), lambda i: (0, 0),               # bias
                             **resident_mode),
            ]
            out_specs = pl.BlockSpec((tm, embed), lambda i: (i, 0))
            scratch_shapes = ()
            kernel = partial(_fc_norm_kernel, no_imgnorm=no_imgnorm)
            dims = ("parallel",)
        else:
            grid = (row_steps, k_steps)
            in_specs = [
                pl.BlockSpec((tm, k_tile), lambda i, k: (i, k)),
                pl.BlockSpec((k_tile, embed), lambda i, k: (k, 0)),
                pl.BlockSpec((1, embed), lambda i, k: (0, 0),
                             **resident_mode),
            ]
            out_specs = pl.BlockSpec((tm, embed), lambda i, k: (i, 0))
            scratch_shapes = (pltpu.VMEM((tm, embed), jnp.float32),)
            kernel = partial(_fc_norm_ktiled_kernel, no_imgnorm=no_imgnorm)
            dims = ("parallel", "arbitrary")

        return pl.pallas_call(
            kernel,
            out_shape=jax.ShapeDtypeStruct((M, embed), out_dtype),
            grid_spec=pltpu.PrefetchScalarGridSpec(
                num_scalar_prefetch=0,
                grid=grid,
                in_specs=in_specs,
                out_specs=out_specs,
                scratch_shapes=scratch_shapes),
            compiler_params=pltpu.CompilerParams(
                dimension_semantics=dims,
                vmem_limit_bytes=vmem_limit),
            cost_estimate=cost,
        )(x, w, b)

    try:
        out = _build_and_run(single_buffer_resident=True)
    except Exception:
        # Fallback for jax builds that reject single-buffered pipeline_mode;
        # identical kernel, default double-buffering for W/bias.
        out = _build_and_run(single_buffer_resident=False)

    return out.reshape(*lead, embed)


def init_params(key, img_dim, embed_size):
    """Matches EncoderImage.init_weights: W ~ U(-r, r), r = sqrt(6)/sqrt(in+out);
    b = 0.  Weight stored pre-transposed as (in, out) so the kernel does x @ W + b."""
    r = np.sqrt(6.0) / np.sqrt(img_dim + embed_size)
    weight = jax.random.uniform(key, (img_dim, embed_size), jnp.float32, -r, r)
    bias = jnp.zeros((1, embed_size), jnp.float32)
    return weight, bias


def encoder_image_reference(images, weight, bias, *, no_imgnorm=False):
    """Pure-JAX (f32) reference of the PyTorch forward."""
    emb = images @ weight + bias
    if not no_imgnorm:
        norm = jnp.sqrt(jnp.sum(emb ** 2, axis=-1, keepdims=True)) + 1e-8
        emb = emb / norm
    return emb


if __name__ == "__main__":
    key = jax.random.PRNGKey(0)
    k_img, k_w, k_img2, k_w2 = jax.random.split(key, 4)

    # --- Main test: batch=2, regions=8, img_dim=32, embed_size=32 (resident-W path)
    B, R, IMG_DIM, EMBED = 2, 8, 32, 32
    images = jax.random.normal(k_img, (B, R, IMG_DIM), jnp.float32)
    weight, bias = init_params(k_w, IMG_DIM, EMBED)

    out = jax.block_until_ready(
        encoder_image_forward(images, weight, bias, no_imgnorm=False))
    ref = encoder_image_reference(images, weight, bias, no_imgnorm=False)
    assert out.shape == (B, R, EMBED)
    # bf16 matmul inputs (f32 accumulation) -> loosened tolerances vs f32 reference.
    np.testing.assert_allclose(np.asarray(out), np.asarray(ref),
                               rtol=2e-2, atol=2e-2)

    # --- no_imgnorm path ---
    out2 = jax.block_until_ready(
        encoder_image_forward(images, weight, bias, no_imgnorm=True))
    ref2 = encoder_image_reference(images, weight, bias, no_imgnorm=True)
    np.testing.assert_allclose(np.asarray(out2), np.asarray(ref2),
                               rtol=2e-2, atol=2e-2)

    # --- K-tiled accumulator path (v7x VMEM plan) + ragged last row block ---
    # M = 200 rows -> tm = 192 (ragged tail masked by Pallas), K tiled 256 -> 2x128.
    B2, R2, IMG_DIM2, EMBED2 = 2, 100, 256, 128
    images2 = jax.random.normal(k_img2, (B2, R2, IMG_DIM2), jnp.float32)
    weight2, bias2 = init_params(k_w2, IMG_DIM2, EMBED2)
    out3 = jax.block_until_ready(
        encoder_image_forward(images2, weight2, bias2, no_imgnorm=False,
                              k_tile=128))
    ref3 = encoder_image_reference(images2, weight2, bias2, no_imgnorm=False)
    np.testing.assert_allclose(np.asarray(out3), np.asarray(ref3),
                               rtol=2e-2, atol=2e-2)

    print("KERNEL_OK")
</pallas_src>

<mosaic_0001>
module attributes {stable_mosaic.version = 11 : i64} {
  func.func @_fc_norm_kernel(%arg0: i32, %arg1: memref<16x32xbf16, #tpu.memory_space<vmem>>, %arg2: memref<32x32xbf16, #tpu.memory_space<vmem>>, %arg3: memref<1x32xf32, #tpu.memory_space<vmem>>, %arg4: memref<16x32xf32, #tpu.memory_space<vmem>>) attributes {dimension_semantics = [#tpu.dimension_semantics<parallel>], iteration_bounds = array<i64: 1>, scalar_prefetch = 0 : i64, scratch_operands = 0 : i64, tpu.core_type = #tpu.core_type<tc>, window_params = [{transform_indices = @transform_0, window_bounds = array<i64: 16, 32>}, {pipeline_mode = #tpu.pipeline_mode<synchronous>, transform_indices = @transform_1, window_bounds = array<i64: 32, 32>}, {pipeline_mode = #tpu.pipeline_mode<synchronous>, transform_indices = @transform_2, window_bounds = array<i64: 1, 32>}, {transform_indices = @transform_3, window_bounds = array<i64: 16, 32>}]} {
    %c0 = arith.constant 0 : index
    %c0_0 = arith.constant 0 : index
    %0 = vector.load %arg1[%c0, %c0_0] : memref<16x32xbf16, #tpu.memory_space<vmem>>, vector<16x32xbf16>
    %c0_1 = arith.constant 0 : index
    %c0_2 = arith.constant 0 : index
    %1 = vector.load %arg2[%c0_1, %c0_2] : memref<32x32xbf16, #tpu.memory_space<vmem>>, vector<32x32xbf16>
    %cst = arith.constant dense<0.000000e+00> : vector<16x32xf32>
    %2 = tpu.matmul %0, %1, %cst {dimension_numbers = #tpu.dot_dimension_numbers<[1], [0], [0], [1], [0, 0, 1, 1], [], []>} : vector<16x32xbf16>, vector<32x32xbf16>, vector<16x32xf32> -> vector<16x32xf32>
    %c0_3 = arith.constant 0 : index
    %c0_4 = arith.constant 0 : index
    %3 = vector.load %arg3[%c0_3, %c0_4] : memref<1x32xf32, #tpu.memory_space<vmem>>, vector<1x32xf32>
    %4 = vector.broadcast %3 : vector<1x32xf32> to vector<16x32xf32>
    %5 = arith.addf %2, %4 : vector<16x32xf32>
    %6 = arith.mulf %5, %5 : vector<16x32xf32>
    %cst_5 = arith.constant dense<0.000000e+00> : vector<16xf32>
    %7 = vector.multi_reduction <add>, %6, %cst_5 [1] : vector<16x32xf32> to vector<16xf32>
    %8 = vector.shape_cast %7 : vector<16xf32> to vector<16x1xf32>
    %9 = math.sqrt %8 : vector<16x1xf32>
    %cst_6 = arith.constant 9.99999993E-9 : f32
    %10 = vector.broadcast %cst_6 : f32 to vector<16x1xf32>
    %11 = arith.addf %9, %10 : vector<16x1xf32>
    %12 = tpu.reciprocal %11 {approx = true} : vector<16x1xf32> -> vector<16x1xf32>
    %13 = vector.broadcast %12 : vector<16x1xf32> to vector<16x32xf32>
    %14 = arith.mulf %5, %13 : vector<16x32xf32>
    %c0_7 = arith.constant 0 : index
    %c0_8 = arith.constant 0 : index
    %15 = vector.load %arg4[%c0_7, %c0_8] : memref<16x32xf32, #tpu.memory_space<vmem>>, vector<16x32xf32>
    tpu.vector_store %arg4[%c0_7, %c0_8], %14 {strides = array<i32>} : memref<16x32xf32, #tpu.memory_space<vmem>>, vector<16x32xf32>,
    return
  }
  func.func @transform_0(%arg0: i32) -> (i32, i32) {
    %c0_i32 = arith.constant 0 : i32
    %c0_i32_0 = arith.constant 0 : i32
    return %arg0, %c0_i32 : i32, i32
  }
  func.func @transform_1(%arg0: i32) -> (i32, i32) {
    %c0_i32 = arith.constant 0 : i32
    %c0_i32_0 = arith.constant 0 : i32
    %c0_i32_1 = arith.constant 0 : i32
    return %c0_i32, %c0_i32_0 : i32, i32
  }
  func.func @transform_2(%arg0: i32) -> (i32, i32) {
    %c0_i32 = arith.constant 0 : i32
    %c0_i32_0 = arith.constant 0 : i32
    %c0_i32_1 = arith.constant 0 : i32
    return %c0_i32, %c0_i32_0 : i32, i32
  }
  func.func @transform_3(%arg0: i32) -> (i32, i32) {
    %c0_i32 = arith.constant 0 : i32
    %c0_i32_0 = arith.constant 0 : i32
    return %arg0, %c0_i32 : i32, i32
  }
}

module attributes {stable_mosaic.version = 11 : i64} {
  func.func @_fc_norm_kernel(%arg0: i32, %arg1: memref<16x32xbf16, #tpu.memory_space<vmem>>, %arg2: memref<32x32xbf16, #tpu.memory_space<vmem>>, %arg3: memref<1x32xf32, #tpu.memory_space<vmem>>, %arg4: memref<16x32xf32, #tpu.memory_space<vmem>>) attributes {dimension_semantics = [#tpu.dimension_semantics<parallel>], iteration_bounds = array<i64: 1>, scalar_prefetch = 0 : i64, scratch_operands = 0 : i64, tpu.core_type = #tpu.core_type<tc>, window_params = [{transform_indices = @transform_0, window_bounds = array<i64: 16, 32>}, {pipeline_mode = #tpu.pipeline_mode<synchronous>, transform_indices = @transform_1, window_bounds = array<i64: 32, 32>}, {pipeline_mode = #tpu.pipeline_mode<synchronous>, transform_indices = @transform_2, window_bounds = array<i64: 1, 32>}, {transform_indices = @transform_3, window_bounds = array<i64: 16, 32>}]} {
    %c0 = arith.constant 0 : index
    %c0_0 = arith.constant 0 : index
    %0 = vector.load %arg1[%c0, %c0_0] : memref<16x32xbf16, #tpu.memory_space<vmem>>, vector<16x32xbf16>
    %c0_1 = arith.constant 0 : index
    %c0_2 = arith.constant 0 : index
    %1 = vector.load %arg2[%c0_1, %c0_2] : memref<32x32xbf16, #tpu.memory_space<vmem>>, vector<32x32xbf16>
    %cst = arith.constant dense<0.000000e+00> : vector<16x32xf32>
    %2 = tpu.matmul %0, %1, %cst {dimension_numbers = #tpu.dot_dimension_numbers<[1], [0], [0], [1], [0, 0, 1, 1], [], []>} : vector<16x32xbf16>, vector<32x32xbf16>, vector<16x32xf32> -> vector<16x32xf32>
    %c0_3 = arith.constant 0 : index
    %c0_4 = arith.constant 0 : index
    %3 = vector.load %arg3[%c0_3, %c0_4] : memref<1x32xf32, #tpu.memory_space<vmem>>, vector<1x32xf32>
    %4 = vector.broadcast %3 : vector<1x32xf32> to vector<16x32xf32>
    %5 = arith.addf %2, %4 : vector<16x32xf32>
    %6 = arith.mulf %5, %5 : vector<16x32xf32>
    %cst_5 = arith.constant dense<0.000000e+00> : vector<16xf32>
    %7 = vector.multi_reduction <add>, %6, %cst_5 [1] : vector<16x32xf32> to vector<16xf32>
    %8 = vector.shape_cast %7 : vector<16xf32> to vector<16x1xf32>
    %9 = math.sqrt %8 : vector<16x1xf32>
    %cst_6 = arith.constant 9.99999993E-9 : f32
    %10 = vector.broadcast %cst_6 : f32 to vector<16x1xf32>
    %11 = arith.addf %9, %10 : vector<16x1xf32>
    %12 = tpu.reciprocal %11 {approx = true} : vector<16x1xf32> -> vector<16x1xf32>
    %13 = vector.broadcast %12 : vector<16x1xf32> to vector<16x32xf32>
    %14 = arith.mulf %5, %13 : vector<16x32xf32>
    %c0_7 = arith.constant 0 : index
    %c0_8 = arith.constant 0 : index
    %15 = vector.load %arg4[%c0_7, %c0_8] : memref<16x32xf32, #tpu.memory_space<vmem>>, vector<16x32xf32>
    tpu.vector_store %arg4[%c0_7, %c0_8], %14 {strides = array<i32>} : memref<16x32xf32, #tpu.memory_space<vmem>>, vector<16x32xf32>,
    return
  }
  func.func @transform_0(%arg0: i32) -> (i32, i32) {
    %c0_i32 = arith.constant 0 : i32
    %c0_i32_0 = arith.constant 0 : i32
    return %arg0, %c0_i32 : i32, i32
  }
  func.func @transform_1(%arg0: i32) -> (i32, i32) {
    %c0_i32 = arith.constant 0 : i32
    %c0_i32_0 = arith.constant 0 : i32
    %c0_i32_1 = arith.constant 0 : i32
    return %c0_i32, %c0_i32_0 : i32, i32
  }
  func.func @transform_2(%arg0: i32) -> (i32, i32) {
    %c0_i32 = arith.constant 0 : i32
    %c0_i32_0 = arith.constant 0 : i32
    %c0_i32_1 = arith.constant 0 : i32
    return %c0_i32, %c0_i32_0 : i32, i32
  }
  func.func @transform_3(%arg0: i32) -> (i32, i32) {
    %c0_i32 = arith.constant 0 : i32
    %c0_i32_0 = arith.constant 0 : i32
    return %arg0, %c0_i32 : i32, i32
  }
}

</mosaic_0001>

<bundles_post_ra>
// kernel: tpu_custom_call.1
= control target key start
LH: loop header
LB: loop body
LE: loop exit
PB: predicated region body
PF: predicated region fallthrough
CT: control target
= control target key end

     0   :  { %8 = vsyncpa [#allocation3], 0  ;;  %s348_s0 = inlined_call_operand.hbm [shape: bf16[16,32], index: 0, kind: input, shape index: {}]   ;;  %s349_s1 = inlined_call_operand.hbm [shape: bf16[32,32], index: 1, kind: input, shape index: {}]   ;;  %s350_s2 = inlined_call_operand.vmem [shape: f32[1,32], index: 2, kind: input, shape index: {}]   ;;  %s351_s3 = inlined_call_operand.hbm [shape: f32[16,32], index: 3, kind: output, shape index: {}]  }
   0x1   :  { %9 = vsyncpa [#allocation6], 0 }
   0x2   :  { %10 = vsyncpa [#allocation4], 0  ;;  %s275_s12 = smov [#allocation2]   ;;  %s203_s16 = scalar_lea.hbm %s348_s0, 128 }
   0x3   :  { %s16_s13 = sshll.u32 %s275_s12, 4  ;;  %p204_p0 = scmp.ne.s32.totalorder %s348_s0, %s203_s16  ;;  %s17_s13 = int_to_ptr.vmem [resolvable:$true] %s16_s13 }
   0x4   :  { %p207_p1 = scmp.lt.u32.totalorder %s203_s16, %s348_s0 }
   0x6   :  { %p209_p2 = pnand %p207_p1, %p204_p0 }
   0x8   :  { %212 = shalt.err (!%p209_p2)
}
   0x9   :  { %s213_s21 = scalar_lea.vmem %s17_s13, 128  ;;  %p218_p4 = scmp.lt.s32.totalorder %s17_s13, %s17_s13 }
   0xa   :  { %p214_p3 = scmp.ne.s32.totalorder %s17_s13, %s213_s21  ;;  %p219_p5 = scmp.lt.s32.totalorder %s213_s21, %s213_s21 }
   0xc   :  { %p220_p6 = por %p219_p5, %p218_p4 }
   0xe   :  { %p221_p7 = pnand %p220_p6, %p214_p3 }
  0x10   :  { %224 = shalt.err (!%p221_p7)
}
  0x11   :  { %s276_s22 = smov 64   ;;  %s277_s23 = smov 4  }
  0x12   :  { %22 = dma.hbm_to_vmem [thread:$0]  %s348_s0, 128, %s17_s13, [#allocation3], %s276_s22, %s276_s22, %s277_s23  }
  0x13   :  { %s278_s26 = smov [#allocation5]   ;;  %s225_s30 = scalar_lea.hbm %s349_s1, 256 }
  0x14   :  { %s28_s27 = sshll.u32 %s278_s26, 4  ;;  %p226_p8 = scmp.ne.s32.totalorder %s349_s1, %s225_s30  ;;  %s29_s27 = int_to_ptr.vmem [resolvable:$true] %s28_s27 }
  0x15   :  { %p229_p9 = scmp.lt.u32.totalorder %s225_s30, %s349_s1 }
  0x17   :  { %p231_p10 = pnand %p229_p9, %p226_p8 }
  0x19   :  { %234 = shalt.err (!%p231_p10)
}
  0x1a   :  { %s235_s8 = scalar_lea.vmem %s29_s27, 256  ;;  %p240_p12 = scmp.lt.s32.totalorder %s29_s27, %s29_s27 }
  0x1b   :  { %p236_p11 = scmp.ne.s32.totalorder %s29_s27, %s235_s8  ;;  %p241_p13 = scmp.lt.s32.totalorder %s235_s8, %s235_s8 }
  0x1d   :  { %p242_p0 = por %p241_p13, %p240_p12 }
  0x1f   :  { %p243_p1 = pnand %p242_p0, %p236_p11 }
  0x21   :  { %246 = shalt.err (!%p243_p1)
}
  0x22   :  { %34 = dma.hbm_to_vmem [thread:$0]  %s349_s1, 256, %s29_s27, [#allocation6], %s276_s22, %s276_s22, %s277_s23  }
  0x23   :  { %269 = dma.done.wait [#allocation3], 128  }
  0x24   :  { %270 = vsyncadd [#allocation3], 4294967168 }
  0x25   :  { %271 = dma.done.wait [#allocation6], 256  }
  0x26   :  { %272 = vsyncadd [#allocation6], 4294967040  ;;  %v279_v0 = vmov 0.0   ;;  %vm280_vm0 = vmmov 0   ;;  %v192_v1 = vld [vmem:[#allocation5] sm:$0xff]   ;;  %v193_v2 = vld [vmem:[#allocation5 + $0x8] sm:$0xff]  }
  0x27   :  { %175 = vmatprep.subr.bf16.mxu0 %v279_v0  ;;  %179 = vmatprep.mubr.msk.bf16.mxu0 %vm280_vm0, %v279_v0  ;;  %v194_v3 = vld [vmem:[#allocation2] sm:$0xff]   ;;  %vm74_vm1 = vcmask 261120   ;;  %s281_s1 = smov [#allocation7]  }
  0x28   :  { %176 = vmatpush3.bf16.msra.mxu0 %v192_v1  ;;  %v167_v4 = vld [vmem:[%s350_s2] ss:$0 sm:$0xff]  ;;  %s154_s2 = sshll.u32 %s281_s1, 4  ;;  %s155_s2 = int_to_ptr.vmem [resolvable:$true] %s154_s2 }
  0x29   :  { %177 = vmatprep.subr.bf16.mxu0 %v279_v0  ;;  %s247_s12 = scalar_lea.vmem %s155_s2, 256  ;;  %p252_p3 = scmp.lt.s32.totalorder %s155_s2, %s155_s2 }
  0x2a   :  { %p248_p2 = scmp.ne.s32.totalorder %s155_s2, %s247_s12  ;;  %p253_p4 = scmp.lt.s32.totalorder %s247_s12, %s247_s12 }
  0x2c   :  { %178 = vmatpush3.bf16.msra.mxu0 %v193_v2  ;;  %p254_p5 = por %p253_p4, %p252_p3 }
  0x2e   :  { %p255_p6 = pnand %p254_p5, %p248_p2 }
  0x2f   :  { %180 = vmatmul.mubr.msk.bf16.vlgmr.msra.gmra.mrb[0].mxu0 %vm74_vm1, %v194_v3 }
 0x102   :  { %v112_v5 = vpop.f32.mrb[0].mxu0 }
 0x103   :  { %v113_v6 = vadd.f32 %v167_v4, %v112_v5  ;;  %v181_v7 = vpop.f32.mrb[1].mxu0 }
 0x104   :  { %v115_v8 = vpop.f32.mrb[2].mxu0 }
 0x105   :  { %v116_v9 = vadd.f32 %v167_v4, %v115_v8  ;;  %v182_v10 = vpop.f32.mrb[3].mxu0  ;;  %v119_v11 = vmul.f32 %v113_v6, %v113_v6 }
 0x107   :  { %v121_v12 = vsel %vm74_vm1, %v119_v11, 0.0  ;;  %v120_v13 = vmul.f32 %v116_v9, %v116_v9 }
 0x108   :  { %122 = vadd.xlane.f32.xlu0 %v121_v12 }
 0x109   :  { %v124_v14 = vsel %vm74_vm1, %v120_v13, 0.0 }
 0x10c   :  { %125 = vadd.xlane.f32.xlu0 %v124_v14 }
 0x195   :  { %v123_v15 = vpop.xlane.xlu0 %122 }
 0x196   :  { %195 = vrsqrt.f32 %v123_v15  ;;  %vm129_vm2 = vcmp.eq.f32.partialorder %v123_v15, inf  ;;  %v132_v19 = vand.u32 2147483648, %v123_v15  ;;  %vm131_vm3 = vcmp.eq.f32.partialorder %v123_v15, 0.0 }
 0x199   :  { %v126_v16 = vpop.xlane.xlu0 %125 }
 0x19a   :  { %197 = vrsqrt.f32 %v126_v16  ;;  %vm136_vm4 = vcmp.eq.f32.partialorder %v126_v16, inf  ;;  %v139_v25 = vand.u32 2147483648, %v126_v16  ;;  %vm138_vm5 = vcmp.eq.f32.partialorder %v126_v16, 0.0 }
 0x1a0   :  { %v196_v17 = vpop.eup %195 }
 0x1a1   :  { %v128_v18 = vmul.f32 %v196_v17, %v123_v15 }
 0x1a3   :  { %v130_v20 = vsel %vm129_vm2, %v123_v15, %v128_v18 }
 0x1a4   :  { %v198_v21 = vpop.eup %197  ;;  %v133_v22 = vsel %vm131_vm3, %v132_v19, %v130_v20 }
 0x1a5   :  { %v141_v23 = vadd.f32 1e-08, %v133_v22  ;;  %v135_v24 = vmul.f32 %v198_v21, %v126_v16 }
 0x1a7   :  { %199 = vrcp.f32 %v141_v23  ;;  %v137_v26 = vsel %vm136_vm4, %v126_v16, %v135_v24 }
 0x1a8   :  { %v140_v27 = vsel %vm138_vm5, %v139_v25, %v137_v26 }
 0x1a9   :  { %v142_v28 = vadd.f32 1e-08, %v140_v27 }
 0x1ab   :  { %201 = vrcp.f32 %v142_v28 }
 0x1b1   :  { %v200_v29 = vpop.eup %199 }
 0x1b2   :  { %v145_v30 = vmul.f32 %v200_v29, %v113_v6 }
 0x1b4   :  { %147 = vst.msk [vmem:[#allocation7] sm:$0xff] %vm74_vm1, %v145_v30 }
 0x1b5   :  { %v202_v31 = vpop.eup %201 }
 0x1b6   :  { %v146_v32 = vmul.f32 %v202_v31, %v116_v9 }
 0x1b8   :  { %148 = vst.msk [vmem:[#allocation7 + $0x8] sm:$0xff] %vm74_vm1, %v146_v32 }
 0x1b9   :  { %258 = shalt.err (!%p255_p6)
}
 0x1ba   :  { %s259_s15 = scalar_lea.hbm %s351_s3, 256 }
 0x1bb   :  { %p260_p7 = scmp.ne.s32.totalorder %s351_s3, %s259_s15  ;;  %p263_p8 = scmp.lt.u32.totalorder %s259_s15, %s351_s3 }
 0x1bd   :  { %p265_p9 = pnand %p263_p8, %p260_p7 }
 0x1bf   :  { %268 = shalt.err (!%p265_p9)
}
 0x1c0   :  { %s282_s20 = smov 128   ;;  %s283_s21 = smov 8  }
 0x1c1   :  { %160 = dma.vmem_to_hbm [thread:$0]  %s155_s2, 256, %s351_s3, [#allocation4], %s282_s20, %s282_s20, %s283_s21  }
 0x1c2   :  { %273 = dma.done.wait [#allocation4], 256  }
 0x1c3   :  { %274 = vsyncadd [#allocation4], 4294967040 }
 0x1c4   :  { %164 = vsyncpa [#allocation3], 1 }
 0x1c5   :  { %165 = vsyncpa [#allocation6], 1 }
 0x1c6   :  { %166 = vsyncpa [#allocation4], 1 }

// kernel: tpu_custom_call.1
= control target key start
LH: loop header
LB: loop body
LE: loop exit
PB: predicated region body
PF: predicated region fallthrough
CT: control target
= control target key end

     0   :  { %8 = vsyncpa [#allocation3], 0  ;;  %s348_s0 = inlined_call_operand.hbm [shape: bf16[16,32], index: 0, kind: input, shape index: {}]   ;;  %s349_s1 = inlined_call_operand.hbm [shape: bf16[32,32], index: 1, kind: input, shape index: {}]   ;;  %s350_s2 = inlined_call_operand.vmem [shape: f32[1,32], index: 2, kind: input, shape index: {}]   ;;  %s351_s3 = inlined_call_operand.hbm [shape: f32[16,32], index: 3, kind: output, shape index: {}]  }
   0x1   :  { %9 = vsyncpa [#allocation6], 0 }
   0x2   :  { %10 = vsyncpa [#allocation4], 0  ;;  %s275_s12 = smov [#allocation2]   ;;  %s203_s16 = scalar_lea.hbm %s348_s0, 128 }
   0x3   :  { %s16_s13 = sshll.u32 %s275_s12, 4  ;;  %p204_p0 = scmp.ne.s32.totalorder %s348_s0, %s203_s16  ;;  %s17_s13 = int_to_ptr.vmem [resolvable:$true] %s16_s13 }
   0x4   :  { %p207_p1 = scmp.lt.u32.totalorder %s203_s16, %s348_s0 }
   0x6   :  { %p209_p2 = pnand %p207_p1, %p204_p0 }
   0x8   :  { %212 = shalt.err (!%p209_p2)
}
   0x9   :  { %s213_s21 = scalar_lea.vmem %s17_s13, 128  ;;  %p218_p4 = scmp.lt.s32.totalorder %s17_s13, %s17_s13 }
   0xa   :  { %p214_p3 = scmp.ne.s32.totalorder %s17_s13, %s213_s21  ;;  %p219_p5 = scmp.lt.s32.totalorder %s213_s21, %s213_s21 }
   0xc   :  { %p220_p6 = por %p219_p5, %p218_p4 }
   0xe   :  { %p221_p7 = pnand %p220_p6, %p214_p3 }
  0x10   :  { %224 = shalt.err (!%p221_p7)
}
  0x11   :  { %s276_s22 = smov 64   ;;  %s277_s23 = smov 4  }
  0x12   :  { %22 = dma.hbm_to_vmem [thread:$0]  %s348_s0, 128, %s17_s13, [#allocation3], %s276_s22, %s276_s22, %s277_s23  }
  0x13   :  { %s278_s26 = smov [#allocation5]   ;;  %s225_s30 = scalar_lea.hbm %s349_s1, 256 }
  0x14   :  { %s28_s27 = sshll.u32 %s278_s26, 4  ;;  %p226_p8 = scmp.ne.s32.totalorder %s349_s1, %s225_s30  ;;  %s29_s27 = int_to_ptr.vmem [resolvable:$true] %s28_s27 }
  0x15   :  { %p229_p9 = scmp.lt.u32.totalorder %s225_s30, %s349_s1 }
  0x17   :  { %p231_p10 = pnand %p229_p9, %p226_p8 }
  0x19   :  { %234 = shalt.err (!%p231_p10)
}
  0x1a   :  { %s235_s8 = scalar_lea.vmem %s29_s27, 256  ;;  %p240_p12 = scmp.lt.s32.totalorder %s29_s27, %s29_s27 }
  0x1b   :  { %p236_p11 = scmp.ne.s32.totalorder %s29_s27, %s235_s8  ;;  %p241_p13 = scmp.lt.s32.totalorder %s235_s8, %s235_s8 }
  0x1d   :  { %p242_p0 = por %p241_p13, %p240_p12 }
  0x1f   :  { %p243_p1 = pnand %p242_p0, %p236_p11 }
  0x21   :  { %246 = shalt.err (!%p243_p1)
}
  0x22   :  { %34 = dma.hbm_to_vmem [thread:$0]  %s349_s1, 256, %s29_s27, [#allocation6], %s276_s22, %s276_s22, %s277_s23  }
  0x23   :  { %269 = dma.done.wait [#allocation3], 128  }
  0x24   :  { %270 = vsyncadd [#allocation3], 4294967168 }
  0x25   :  { %271 = dma.done.wait [#allocation6], 256  }
  0x26   :  { %272 = vsyncadd [#allocation6], 4294967040  ;;  %v279_v0 = vmov 0.0   ;;  %vm280_vm0 = vmmov 0   ;;  %v192_v1 = vld [vmem:[#allocation5] sm:$0xff]   ;;  %v193_v2 = vld [vmem:[#allocation5 + $0x8] sm:$0xff]  }
  0x27   :  { %175 = vmatprep.subr.bf16.mxu0 %v279_v0  ;;  %179 = vmatprep.mubr.msk.bf16.mxu0 %vm280_vm0, %v279_v0  ;;  %v194_v3 = vld [vmem:[#allocation2] sm:$0xff]   ;;  %vm74_vm1 = vcmask 261120   ;;  %s281_s1 = smov [#allocation7]  }
  0x28   :  { %176 = vmatpush3.bf16.msra.mxu0 %v192_v1  ;;  %v167_v4 = vld [vmem:[%s350_s2] ss:$0 sm:$0xff]  ;;  %s154_s2 = sshll.u32 %s281_s1, 4  ;;  %s155_s2 = int_to_ptr.vmem [resolvable:$true] %s154_s2 }
  0x29   :  { %177 = vmatprep.subr.bf16.mxu0 %v279_v0  ;;  %s247_s12 = scalar_lea.vmem %s155_s2, 256  ;;  %p252_p3 = scmp.lt.s32.totalorder %s155_s2, %s155_s2 }
  0x2a   :  { %p248_p2 = scmp.ne.s32.totalorder %s155_s2, %s247_s12  ;;  %p253_p4 = scmp.lt.s32.totalorder %s247_s12, %s247_s12 }
  0x2c   :  { %178 = vmatpush3.bf16.msra.mxu0 %v193_v2  ;;  %p254_p5 = por %p253_p4, %p252_p3 }
  0x2e   :  { %p255_p6 = pnand %p254_p5, %p248_p2 }
  0x2f   :  { %180 = vmatmul.mubr.msk.bf16.vlgmr.msra.gmra.mrb[0].mxu0 %vm74_vm1, %v194_v3 }
 0x102   :  { %v112_v5 = vpop.f32.mrb[0].mxu0 }
 0x103   :  { %v113_v6 = vadd.f32 %v167_v4, %v112_v5  ;;  %v181_v7 = vpop.f32.mrb[1].mxu0 }
 0x104   :  { %v115_v8 = vpop.f32.mrb[2].mxu0 }
 0x105   :  { %v116_v9 = vadd.f32 %v167_v4, %v115_v8  ;;  %v182_v10 = vpop.f32.mrb[3].mxu0  ;;  %v119_v11 = vmul.f32 %v113_v6, %v113_v6 }
 0x107   :  { %v121_v12 = vsel %vm74_vm1, %v119_v11, 0.0  ;;  %v120_v13 = vmul.f32 %v116_v9, %v116_v9 }
 0x108   :  { %122 = vadd.xlane.f32.xlu0 %v121_v12 }
 0x109   :  { %v124_v14 = vsel %vm74_vm1, %v120_v13, 0.0 }
 0x10c   :  { %125 = vadd.xlane.f32.xlu0 %v124_v14 }
 0x195   :  { %v123_v15 = vpop.xlane.xlu0 %122 }
 0x196   :  { %195 = vrsqrt.f32 %v123_v15  ;;  %vm129_vm2 = vcmp.eq.f32.partialorder %v123_v15, inf  ;;  %v132_v19 = vand.u32 2147483648, %v123_v15  ;;  %vm131_vm3 = vcmp.eq.f32.partialorder %v123_v15, 0.0 }
 0x199   :  { %v126_v16 = vpop.xlane.xlu0 %125 }
 0x19a   :  { %197 = vrsqrt.f32 %v126_v16  ;;  %vm136_vm4 = vcmp.eq.f32.partialorder %v126_v16, inf  ;;  %v139_v25 = vand.u32 2147483648, %v126_v16  ;;  %vm138_vm5 = vcmp.eq.f32.partialorder %v126_v16, 0.0 }
 0x1a0   :  { %v196_v17 = vpop.eup %195 }
 0x1a1   :  { %v128_v18 = vmul.f32 %v196_v17, %v123_v15 }
 0x1a3   :  { %v130_v20 = vsel %vm129_vm2, %v123_v15, %v128_v18 }
 0x1a4   :  { %v198_v21 = vpop.eup %197  ;;  %v133_v22 = vsel %vm131_vm3, %v132_v19, %v130_v20 }
 0x1a5   :  { %v141_v23 = vadd.f32 1e-08, %v133_v22  ;;  %v135_v24 = vmul.f32 %v198_v21, %v126_v16 }
 0x1a7   :  { %199 = vrcp.f32 %v141_v23  ;;  %v137_v26 = vsel %vm136_vm4, %v126_v16, %v135_v24 }
 0x1a8   :  { %v140_v27 = vsel %vm138_vm5, %v139_v25, %v137_v26 }
 0x1a9   :  { %v142_v28 = vadd.f32 1e-08, %v140_v27 }
 0x1ab   :  { %201 = vrcp.f32 %v142_v28 }
 0x1b1   :  { %v200_v29 = vpop.eup %199 }
 0x1b2   :  { %v145_v30 = vmul.f32 %v200_v29, %v113_v6 }
 0x1b4   :  { %147 = vst.msk [vmem:[#allocation7] sm:$0xff] %vm74_vm1, %v145_v30 }
 0x1b5   :  { %v202_v31 = vpop.eup %201 }
 0x1b6   :  { %v146_v32 = vmul.f32 %v202_v31, %v116_v9 }
 0x1b8   :  { %148 = vst.msk [vmem:[#allocation7 + $0x8] sm:$0xff] %vm74_vm1, %v146_v32 }
 0x1b9   :  { %258 = shalt.err (!%p255_p6)
}
 0x1ba   :  { %s259_s15 = scalar_lea.hbm %s351_s3, 256 }
 0x1bb   :  { %p260_p7 = scmp.ne.s32.totalorder %s351_s3, %s259_s15  ;;  %p263_p8 = scmp.lt.u32.totalorder %s259_s15, %s351_s3 }
 0x1bd   :  { %p265_p9 = pnand %p263_p8, %p260_p7 }
 0x1bf   :  { %268 = shalt.err (!%p265_p9)
}
 0x1c0   :  { %s282_s20 = smov 128   ;;  %s283_s21 = smov 8  }
 0x1c1   :  { %160 = dma.vmem_to_hbm [thread:$0]  %s155_s2, 256, %s351_s3, [#allocation4], %s282_s20, %s282_s20, %s283_s21  }
 0x1c2   :  { %273 = dma.done.wait [#allocation4], 256  }
 0x1c3   :  { %274 = vsyncadd [#allocation4], 4294967040 }
 0x1c4   :  { %164 = vsyncpa [#allocation3], 1 }
 0x1c5   :  { %165 = vsyncpa [#allocation6], 1 }
 0x1c6   :  { %166 = vsyncpa [#allocation4], 1 }

</bundles_post_ra>
